<compile_context>
chip_gen: v7x
topology: tpu7x:2x2x1
jax: 0.10.0
libtpu: 0.0.40
codegen_flags: <defaults>
</compile_context>

<pallas_src>
import jax
import jax.numpy as jnp
from jax import lax
from jax.experimental import pallas as pl
from jax.experimental.pallas import tpu as pltpu

LN_EPS = 1e-5
TM_MAX = 256      # row tile: multiple of 8 (fits 2x256^2 MXU on v6e/v7x, 128-mult on v5e)
TN_MAX = 2048     # vocab tile: multiple of 128 -> lane-dense unmasked stores


def _round_up(x, m):
    return ((x + m - 1) // m) * m


def _lm_head_kernel(x_ref, w1_ref, b1_ref, gamma_ref, beta_ref,
                    w2_ref, b2_ref, out_ref, h_ref):
    # Dense + GELU + LayerNorm: compute once per row tile (vocab is the inner
    # grid axis), cache in VMEM scratch, reuse for all V//TN decoder tiles.
    @pl.when(pl.program_id(1) == 0)
    def _():
        h = jnp.dot(x_ref[...], w1_ref[...],
                    preferred_element_type=jnp.float32)        # bf16 in, f32 acc
        h = h + b1_ref[...]                                    # (1, H) broadcasts
        inv_sqrt2 = jnp.float32(0.7071067811865476)
        h = 0.5 * h * (1.0 + lax.erf(h * inv_sqrt2))           # exact GELU (f32)
        mean = jnp.mean(h, axis=-1, keepdims=True)
        centered = h - mean
        var = jnp.mean(centered * centered, axis=-1, keepdims=True)
        h = centered * lax.rsqrt(var + jnp.float32(LN_EPS))
        h_ref[...] = h * gamma_ref[...] + beta_ref[...]

    # Decoder tile: (TM, H) @ (H, TN) on the MXU, bf16 operands, f32 accumulation.
    y = jnp.dot(h_ref[...].astype(jnp.bfloat16), w2_ref[...],
                preferred_element_type=jnp.float32)
    out_ref[...] = (y + b2_ref[...]).astype(out_ref.dtype)


def _nsp_kernel(p_ref, w_ref, b_ref, out_ref):
    y = jnp.dot(p_ref[...], w_ref[...], preferred_element_type=jnp.float32)
    out_ref[...] = (y + b_ref[...]).astype(out_ref.dtype)


def bert_pretraining_heads(sequence_output, pooled_output, params):
    """sequence_output: (B, S, H) f32, pooled_output: (B, H) f32
    -> (prediction_scores (B, S, V) f32, seq_relationship_scores (B, 2) f32)."""
    B, S, H = sequence_output.shape
    V = params["w_dec"].shape[1]
    N = B * S

    # Tile sizes adapt to small shapes but cap at production-sized tiles.
    tm = min(TM_MAX, _round_up(N, 8))
    n_pad = _round_up(N, tm)
    tn = min(TN_MAX, _round_up(V, 128))
    v_pad = _round_up(V, tn)

    x2d = sequence_output.reshape(N, H)
    x_p = jnp.pad(x2d, ((0, n_pad - N), (0, 0))).astype(jnp.bfloat16)
    w1 = params["w_dense"].astype(jnp.bfloat16)
    w2 = jnp.pad(params["w_dec"], ((0, 0), (0, v_pad - V))).astype(jnp.bfloat16)
    b2 = jnp.pad(params["b_dec"], ((0, 0), (0, v_pad - V)))

    grid = (n_pad // tm, v_pad // tn)

    logits = pl.pallas_call(
        _lm_head_kernel,
        out_shape=jax.ShapeDtypeStruct((n_pad, v_pad), jnp.float32),
        grid_spec=pltpu.PrefetchScalarGridSpec(
            num_scalar_prefetch=0,
            grid=grid,
            in_specs=[
                pl.BlockSpec((tm, H), lambda i, j: (i, 0)),   # x rows (bf16)
                pl.BlockSpec((H, H), lambda i, j: (0, 0)),    # dense weight (bf16)
                pl.BlockSpec((1, H), lambda i, j: (0, 0)),    # dense bias (f32)
                pl.BlockSpec((1, H), lambda i, j: (0, 0)),    # LN gamma
                pl.BlockSpec((1, H), lambda i, j: (0, 0)),    # LN beta
                pl.BlockSpec((H, tn), lambda i, j: (0, j)),   # decoder weight tile (bf16)
                pl.BlockSpec((1, tn), lambda i, j: (0, j)),   # output bias tile
            ],
            out_specs=pl.BlockSpec((tm, tn), lambda i, j: (i, j)),
            scratch_shapes=[pltpu.VMEM((tm, H), jnp.float32)],  # cached transform
        ),
        compiler_params=pltpu.CompilerParams(
            dimension_semantics=("parallel", "arbitrary"),      # rows across TCs on v7x
            vmem_limit_bytes=48 << 20,                          # headroom for v7x 64 MiB
        ),
    )(x_p, w1, params["b_dense"], params["ln_gamma"], params["ln_beta"], w2, b2)

    prediction_scores = logits[:N, :V].reshape(B, S, V)

    # NSP head: tiny (B x H x 2) — single-block f32 kernel.
    seq_relationship = pl.pallas_call(
        _nsp_kernel,
        out_shape=jax.ShapeDtypeStruct((B, 2), jnp.float32),
        in_specs=[
            pl.BlockSpec((B, H), lambda: (0, 0)),
            pl.BlockSpec((H, 2), lambda: (0, 0)),
            pl.BlockSpec((1, 2), lambda: (0, 0)),
        ],
        out_specs=pl.BlockSpec((B, 2), lambda: (0, 0)),
    )(pooled_output, params["w_seq"], params["b_seq"])

    return prediction_scores, seq_relationship


def _reference(sequence_output, pooled_output, params):
    """Pure-JAX reference mirroring the kernel's bf16-operand / f32-accum matmuls."""
    bf = jnp.bfloat16
    h = jnp.dot(sequence_output.astype(bf), params["w_dense"].astype(bf),
                preferred_element_type=jnp.float32)
    h = h + params["b_dense"][0]
    h = 0.5 * h * (1.0 + lax.erf(h * jnp.float32(0.7071067811865476)))
    mean = jnp.mean(h, axis=-1, keepdims=True)
    var = jnp.mean((h - mean) ** 2, axis=-1, keepdims=True)
    h = (h - mean) * lax.rsqrt(var + jnp.float32(LN_EPS))
    h = h * params["ln_gamma"][0] + params["ln_beta"][0]
    logits = jnp.dot(h.astype(bf), params["w_dec"].astype(bf),
                     preferred_element_type=jnp.float32) + params["b_dec"][0]
    nsp = pooled_output @ params["w_seq"] + params["b_seq"][0]
    return logits, nsp


def init_params(key, hidden_size, vocab_size):
    k1, k2, k3 = jax.random.split(key, 3)
    scale = 0.02
    return {
        # stored as (in_features, out_features) = transpose of torch Linear.weight
        "w_dense": scale * jax.random.normal(k1, (hidden_size, hidden_size), jnp.float32),
        "b_dense": jnp.zeros((1, hidden_size), jnp.float32),
        "ln_gamma": jnp.ones((1, hidden_size), jnp.float32),
        "ln_beta": jnp.zeros((1, hidden_size), jnp.float32),
        "w_dec": scale * jax.random.normal(k2, (hidden_size, vocab_size), jnp.float32),
        "b_dec": jnp.zeros((1, vocab_size), jnp.float32),       # output_bias
        "w_seq": scale * jax.random.normal(k3, (hidden_size, 2), jnp.float32),
        "b_seq": jnp.zeros((1, 2), jnp.float32),
    }


if __name__ == "__main__":
    batch, seq, hidden, vocab = 2, 8, 32, 64

    key = jax.random.PRNGKey(0)
    kx, kp, kq = jax.random.split(key, 3)
    sequence_output = jax.random.normal(kx, (batch, seq, hidden), jnp.float32)
    pooled_output = jax.random.normal(kq, (batch, hidden), jnp.float32)
    params = init_params(kp, hidden, vocab)

    scores, nsp = bert_pretraining_heads(sequence_output, pooled_output, params)
    scores = jax.block_until_ready(scores)
    nsp = jax.block_until_ready(nsp)

    scores_ref, nsp_ref = _reference(sequence_output, pooled_output, params)
    assert scores.shape == (batch, seq, vocab)
    assert nsp.shape == (batch, 2)
    assert jnp.allclose(scores, scores_ref, atol=1e-3, rtol=1e-3), "LM head mismatch"
    assert jnp.allclose(nsp, nsp_ref, atol=1e-5, rtol=1e-5), "NSP head mismatch"

    print("KERNEL_OK")
</pallas_src>

<mosaic_0001>
module attributes {stable_mosaic.version = 11 : i64} {
  func.func @_lm_head_kernel(%arg0: i32, %arg1: i32, %arg2: memref<16x32xbf16, #tpu.memory_space<vmem>>, %arg3: memref<32x32xbf16, #tpu.memory_space<vmem>>, %arg4: memref<1x32xf32, #tpu.memory_space<vmem>>, %arg5: memref<1x32xf32, #tpu.memory_space<vmem>>, %arg6: memref<1x32xf32, #tpu.memory_space<vmem>>, %arg7: memref<32x128xbf16, #tpu.memory_space<vmem>>, %arg8: memref<1x128xf32, #tpu.memory_space<vmem>>, %arg9: memref<16x128xf32, #tpu.memory_space<vmem>>, %arg10: memref<16x32xf32, #tpu.memory_space<vmem>>) attributes {dimension_semantics = [#tpu.dimension_semantics<parallel>, #tpu.dimension_semantics<arbitrary>], iteration_bounds = array<i64: 1, 1>, scalar_prefetch = 0 : i64, scratch_operands = 1 : i64, tpu.core_type = #tpu.core_type<tc>, window_params = [{transform_indices = @transform_0, window_bounds = array<i64: 16, 32>}, {pipeline_mode = #tpu.pipeline_mode<synchronous>, transform_indices = @transform_1, window_bounds = array<i64: 32, 32>}, {pipeline_mode = #tpu.pipeline_mode<synchronous>, transform_indices = @transform_2, window_bounds = array<i64: 1, 32>}, {pipeline_mode = #tpu.pipeline_mode<synchronous>, transform_indices = @transform_3, window_bounds = array<i64: 1, 32>}, {pipeline_mode = #tpu.pipeline_mode<synchronous>, transform_indices = @transform_4, window_bounds = array<i64: 1, 32>}, {transform_indices = @transform_5, window_bounds = array<i64: 32, 128>}, {transform_indices = @transform_6, window_bounds = array<i64: 1, 128>}, {transform_indices = @transform_7, window_bounds = array<i64: 16, 128>}]} {
    %c0_i32 = arith.constant 0 : i32
    %0 = arith.cmpi eq, %arg1, %c0_i32 : i32
    %1 = arith.extui %0 : i1 to i32
    %c0_i32_0 = arith.constant 0 : i32
    %2 = arith.cmpi ne, %1, %c0_i32_0 : i32
    scf.if %2 {
      %c0_8 = arith.constant 0 : index
      %c0_9 = arith.constant 0 : index
      %11 = vector.load %arg2[%c0_8, %c0_9] : memref<16x32xbf16, #tpu.memory_space<vmem>>, vector<16x32xbf16>
      %c0_10 = arith.constant 0 : index
      %c0_11 = arith.constant 0 : index
      %12 = vector.load %arg3[%c0_10, %c0_11] : memref<32x32xbf16, #tpu.memory_space<vmem>>, vector<32x32xbf16>
      %cst_12 = arith.constant dense<0.000000e+00> : vector<16x32xf32>
      %13 = tpu.matmul %11, %12, %cst_12 {dimension_numbers = #tpu.dot_dimension_numbers<[1], [0], [0], [1], [0, 0, 1, 1], [], []>} : vector<16x32xbf16>, vector<32x32xbf16>, vector<16x32xf32> -> vector<16x32xf32>
      %c0_13 = arith.constant 0 : index
      %c0_14 = arith.constant 0 : index
      %14 = vector.load %arg4[%c0_13, %c0_14] : memref<1x32xf32, #tpu.memory_space<vmem>>, vector<1x32xf32>
      %15 = vector.broadcast %14 : vector<1x32xf32> to vector<16x32xf32>
      %16 = arith.addf %13, %15 : vector<16x32xf32>
      %cst_15 = arith.constant 5.000000e-01 : f32
      %17 = vector.broadcast %cst_15 : f32 to vector<16x32xf32>
      %18 = arith.mulf %17, %16 : vector<16x32xf32>
      %cst_16 = arith.constant 0.707106769 : f32
      %19 = vector.broadcast %cst_16 : f32 to vector<16x32xf32>
      %20 = arith.mulf %16, %19 : vector<16x32xf32>
      %21 = math.erf %20 : vector<16x32xf32>
      %cst_17 = arith.constant 1.000000e+00 : f32
      %22 = vector.broadcast %cst_17 : f32 to vector<16x32xf32>
      %23 = arith.addf %22, %21 : vector<16x32xf32>
      %24 = arith.mulf %18, %23 : vector<16x32xf32>
      %cst_18 = arith.constant dense<0.000000e+00> : vector<16xf32>
      %25 = vector.multi_reduction <add>, %24, %cst_18 [1] : vector<16x32xf32> to vector<16xf32>
      %26 = vector.shape_cast %25 : vector<16xf32> to vector<16x1xf32>
      %cst_19 = arith.constant 3.200000e+01 : f32
      %27 = vector.broadcast %cst_19 : f32 to vector<16x1xf32>
      %28 = arith.divf %26, %27 : vector<16x1xf32>
      %29 = vector.broadcast %28 : vector<16x1xf32> to vector<16x32xf32>
      %30 = arith.subf %24, %29 : vector<16x32xf32>
      %31 = arith.mulf %30, %30 : vector<16x32xf32>
      %cst_20 = arith.constant dense<0.000000e+00> : vector<16xf32>
      %32 = vector.multi_reduction <add>, %31, %cst_20 [1] : vector<16x32xf32> to vector<16xf32>
      %33 = vector.shape_cast %32 : vector<16xf32> to vector<16x1xf32>
      %cst_21 = arith.constant 3.200000e+01 : f32
      %34 = vector.broadcast %cst_21 : f32 to vector<16x1xf32>
      %35 = arith.divf %33, %34 : vector<16x1xf32>
      %cst_22 = arith.constant 9.99999974E-6 : f32
      %36 = vector.broadcast %cst_22 : f32 to vector<16x1xf32>
      %37 = arith.addf %35, %36 : vector<16x1xf32>
      %38 = math.rsqrt %37 : vector<16x1xf32>
      %39 = vector.broadcast %38 : vector<16x1xf32> to vector<16x32xf32>
      %40 = arith.mulf %30, %39 : vector<16x32xf32>
      %c0_23 = arith.constant 0 : index
      %c0_24 = arith.constant 0 : index
      %41 = vector.load %arg5[%c0_23, %c0_24] : memref<1x32xf32, #tpu.memory_space<vmem>>, vector<1x32xf32>
      %42 = vector.broadcast %41 : vector<1x32xf32> to vector<16x32xf32>
      %43 = arith.mulf %40, %42 : vector<16x32xf32>
      %c0_25 = arith.constant 0 : index
      %c0_26 = arith.constant 0 : index
      %44 = vector.load %arg6[%c0_25, %c0_26] : memref<1x32xf32, #tpu.memory_space<vmem>>, vector<1x32xf32>
      %45 = vector.broadcast %44 : vector<1x32xf32> to vector<16x32xf32>
      %46 = arith.addf %43, %45 : vector<16x32xf32>
      %c0_27 = arith.constant 0 : index
      %c0_28 = arith.constant 0 : index
      %47 = vector.load %arg10[%c0_27, %c0_28] : memref<16x32xf32, #tpu.memory_space<vmem>>, vector<16x32xf32>
      tpu.vector_store %arg10[%c0_27, %c0_28], %46 {strides = array<i32>} : memref<16x32xf32, #tpu.memory_space<vmem>>, vector<16x32xf32>,
    } else {
    }
    %c0 = arith.constant 0 : index
    %c0_1 = arith.constant 0 : index
    %3 = vector.load %arg10[%c0, %c0_1] : memref<16x32xf32, #tpu.memory_space<vmem>>, vector<16x32xf32>
    %4 = arith.truncf %3 : vector<16x32xf32> to vector<16x32xbf16>
    %c0_2 = arith.constant 0 : index
    %c0_3 = arith.constant 0 : index
    %5 = vector.load %arg7[%c0_2, %c0_3] : memref<32x128xbf16, #tpu.memory_space<vmem>>, vector<32x128xbf16>
    %cst = arith.constant dense<0.000000e+00> : vector<16x128xf32>
    %6 = tpu.matmul %4, %5, %cst {dimension_numbers = #tpu.dot_dimension_numbers<[1], [0], [0], [1], [0, 0, 1, 1], [], []>} : vector<16x32xbf16>, vector<32x128xbf16>, vector<16x128xf32> -> vector<16x128xf32>
    %c0_4 = arith.constant 0 : index
    %c0_5 = arith.constant 0 : index
    %7 = vector.load %arg8[%c0_4, %c0_5] : memref<1x128xf32, #tpu.memory_space<vmem>>, vector<1x128xf32>
    %8 = vector.broadcast %7 : vector<1x128xf32> to vector<16x128xf32>
    %9 = arith.addf %6, %8 : vector<16x128xf32>
    %c0_6 = arith.constant 0 : index
    %c0_7 = arith.constant 0 : index
    %10 = vector.load %arg9[%c0_6, %c0_7] : memref<16x128xf32, #tpu.memory_space<vmem>>, vector<16x128xf32>
    tpu.vector_store %arg9[%c0_6, %c0_7], %9 {strides = array<i32>} : memref<16x128xf32, #tpu.memory_space<vmem>>, vector<16x128xf32>,
    return
  }
  func.func @transform_0(%arg0: i32, %arg1: i32) -> (i32, i32) {
    %c0_i32 = arith.constant 0 : i32
    %c0_i32_0 = arith.constant 0 : i32
    return %arg0, %c0_i32 : i32, i32
  }
  func.func @transform_1(%arg0: i32, %arg1: i32) -> (i32, i32) {
    %c0_i32 = arith.constant 0 : i32
    %c0_i32_0 = arith.constant 0 : i32
    %c0_i32_1 = arith.constant 0 : i32
    return %c0_i32, %c0_i32_0 : i32, i32
  }
  func.func @transform_2(%arg0: i32, %arg1: i32) -> (i32, i32) {
    %c0_i32 = arith.constant 0 : i32
    %c0_i32_0 = arith.constant 0 : i32
    %c0_i32_1 = arith.constant 0 : i32
    return %c0_i32, %c0_i32_0 : i32, i32
  }
  func.func @transform_3(%arg0: i32, %arg1: i32) -> (i32, i32) {
    %c0_i32 = arith.constant 0 : i32
    %c0_i32_0 = arith.constant 0 : i32
    %c0_i32_1 = arith.constant 0 : i32
    return %c0_i32, %c0_i32_0 : i32, i32
  }
  func.func @transform_4(%arg0: i32, %arg1: i32) -> (i32, i32) {
    %c0_i32 = arith.constant 0 : i32
    %c0_i32_0 = arith.constant 0 : i32
    %c0_i32_1 = arith.constant 0 : i32
    return %c0_i32, %c0_i32_0 : i32, i32
  }
  func.func @transform_5(%arg0: i32, %arg1: i32) -> (i32, i32) {
    %c0_i32 = arith.constant 0 : i32
    %c0_i32_0 = arith.constant 0 : i32
    return %c0_i32, %arg1 : i32, i32
  }
  func.func @transform_6(%arg0: i32, %arg1: i32) -> (i32, i32) {
    %c0_i32 = arith.constant 0 : i32
    %c0_i32_0 = arith.constant 0 : i32
    return %c0_i32, %arg1 : i32, i32
  }
  func.func @transform_7(%arg0: i32, %arg1: i32) -> (i32, i32) {
    %c0_i32 = arith.constant 0 : i32
    return %arg0, %arg1 : i32, i32
  }
}

</mosaic_0001>

<bundles_post_ra>
// kernel: tpu_custom_call.1
= control target key start
LH: loop header
LB: loop body
LE: loop exit
PB: predicated region body
PF: predicated region fallthrough
CT: control target
= control target key end

     0   :  { %12 = vsyncpa [#allocation4], 0  ;;  %s572_s0 = inlined_call_operand.hbm [shape: bf16[16,32], index: 0, kind: input, shape index: {}]   ;;  %s573_s1 = inlined_call_operand.hbm [shape: bf16[32,32], index: 1, kind: input, shape index: {}]   ;;  %s574_s2 = inlined_call_operand.vmem [shape: f32[1,32], index: 2, kind: input, shape index: {}]   ;;  %s575_s3 = inlined_call_operand.vmem [shape: f32[1,32], index: 3, kind: input, shape index: {}]   ;;  %s576_s4 = inlined_call_operand.hbm [shape: f32[1,32], index: 4, kind: input, shape index: {}]   ;;  %s577_s5 = inlined_call_operand.vmem [shape: bf16[32,128], index: 5, kind: input, shape index: {}]   ;;  %s578_s6 = inlined_call_operand.vmem [shape: f32[1,128], index: 6, kind: input, shape index: {}]   ;;  %s579_s7 = inlined_call_operand.hbm [shape: f32[16,128], index: 7, kind: output, shape index: {}]  }
   0x1   :  { %13 = vsyncpa [#allocation7], 0 }
   0x2   :  { %14 = vsyncpa [#allocation5], 0  ;;  %s444_s24 = smov [#allocation6]   ;;  %s445_s26 = smov [#allocation3]  }
   0x3   :  { %s32_s25 = sshll.u32 %s444_s24, 4  ;;  %s20_s27 = sshll.u32 %s445_s26, 4  ;;  %s33_s25 = int_to_ptr.vmem [resolvable:$true] %s32_s25  ;;  %s494_s27 = int_to_ptr.vmem [resolvable:$true] %s20_s27 }
   0x4   :  { %s350_s30 = scalar_lea.hbm %s573_s1, 256 }
   0x5   :  { %p351_p0 = scmp.ne.s32.totalorder %s573_s1, %s350_s30  ;;  %p354_p1 = scmp.lt.u32.totalorder %s350_s30, %s573_s1 }
   0x7   :  { %p356_p2 = pnand %p354_p1, %p351_p0 }
   0x9   :  { %359 = shalt.err (!%p356_p2)
}
   0xa   :  { %s360_s12 = scalar_lea.vmem %s33_s25, 256  ;;  %p365_p4 = scmp.lt.s32.totalorder %s33_s25, %s33_s25 }
   0xb   :  { %p361_p3 = scmp.ne.s32.totalorder %s33_s25, %s360_s12  ;;  %p366_p5 = scmp.lt.s32.totalorder %s360_s12, %s360_s12 }
   0xd   :  { %p367_p6 = por %p366_p5, %p365_p4 }
   0xf   :  { %p368_p7 = pnand %p367_p6, %p361_p3 }
  0x11   :  { %371 = shalt.err (!%p368_p7)
}
  0x12   :  { %s446_s13 = smov 64   ;;  %s447_s14 = smov 4  }
  0x13   :  { %38 = dma.hbm_to_vmem [thread:$0]  %s573_s1, 256, %s33_s25, [#allocation7], %s446_s13, %s446_s13, %s447_s14  }
  0x14   :  { %s372_s19 = scalar_lea.hbm %s572_s0, 128 }
  0x15   :  { %p373_p8 = scmp.ne.s32.totalorder %s572_s0, %s372_s19  ;;  %p376_p9 = scmp.lt.u32.totalorder %s372_s19, %s572_s0 }
  0x17   :  { %p378_p10 = pnand %p376_p9, %p373_p8 }
  0x19   :  { %381 = shalt.err (!%p378_p10)
}
  0x1a   :  { %s382_s24 = scalar_lea.vmem %s494_s27, 128  ;;  %p387_p12 = scmp.lt.s32.totalorder %s494_s27, %s494_s27 }
  0x1b   :  { %p383_p11 = scmp.ne.s32.totalorder %s494_s27, %s382_s24  ;;  %p388_p13 = scmp.lt.s32.totalorder %s382_s24, %s382_s24 }
  0x1d   :  { %p389_p0 = por %p388_p13, %p387_p12 }
  0x1f   :  { %p390_p1 = pnand %p389_p0, %p383_p11 }
  0x21   :  { %393 = shalt.err (!%p390_p1)
}
  0x22   :  { %26 = dma.hbm_to_vmem [thread:$0]  %s572_s0, 128, %s494_s27, [#allocation4], %s446_s13, %s446_s13, %s447_s14  }
  0x23   :  { %s448_s26 = smov [#allocation8]   ;;  %s394_s8 = scalar_lea.hbm %s576_s4, 16 }
  0x24   :  { %s49_s28 = sshll.u32 %s448_s26, 4  ;;  %p395_p2 = scmp.ne.s32.totalorder %s576_s4, %s394_s8  ;;  %s50_s28 = int_to_ptr.vmem [resolvable:$true] %s49_s28 }
  0x25   :  { %p398_p3 = scmp.lt.u32.totalorder %s394_s8, %s576_s4 }
  0x27   :  { %p400_p4 = pnand %p398_p3, %p395_p2 }
  0x29   :  { %403 = shalt.err (!%p400_p4)
}
  0x2a   :  { %s404_s15 = scalar_lea.vmem %s50_s28, 16  ;;  %s408_s0 = scalar_lea.vmem %s50_s28, 32 }
  0x2b   :  { %p405_p5 = scmp.ne.s32.totalorder %s50_s28, %s404_s15  ;;  %p409_p6 = scmp.lt.s32.totalorder %s50_s28, %s50_s28 }
  0x2c   :  { %p410_p7 = scmp.lt.s32.totalorder %s408_s0, %s404_s15 }
  0x2e   :  { %p411_p8 = por %p410_p7, %p409_p6 }
  0x30   :  { %p412_p9 = pnand %p411_p8, %p405_p5 }
  0x32   :  { %415 = shalt.err (!%p412_p9)
}
  0x33   :  { %52 = dma.hbm_to_vmem [thread:$0]  %s576_s4, 16, %s50_s28, [#allocation7]  }
  0x34   :  { %438 = dma.done.wait [#allocation4], 128  }
  0x35   :  { %439 = vsyncadd [#allocation4], 4294967168 }
  0x36   :  { %440 = dma.done.wait [#allocation7], 272  }
  0x37   :  { %441 = vsyncadd [#allocation7], 4294967024  ;;  %v449_v0 = vmov 0.0   ;;  %vm450_vm0 = vmmov 0   ;;  %v337_v1 = vld [vmem:[#allocation6] sm:$0xff]   ;;  %v338_v2 = vld [vmem:[#allocation6 + $0x8] sm:$0xff]  }
  0x38   :  { %311 = vmatprep.subr.bf16.mxu0 %v449_v0  ;;  %315 = vmatprep.mubr.msk.bf16.mxu0 %vm450_vm0, %v449_v0  ;;  %v339_v3 = vld [vmem:[#allocation3] sm:$0xff]   ;;  %vm101_vm1 = vcmask 261120   ;;  %v341_v34 = vld [vmem:[%s577_s5 + $0x8] sm:$0xff]   ;;  %v300_v44 = vld [vmem:[#allocation8] ss:$0 sm:$0xff] }
  0x39   :  { %319 = vmatprep.subr.bf16.mxu1 %v449_v0  ;;  %323 = vmatprep.mubr.msk.bf16.mxu1 %vm450_vm0, %v449_v0  ;;  %v294_v4 = vld [vmem:[%s574_s2] ss:$0 sm:$0xff] }
  0x3a   :  { %312 = vmatpush3.bf16.msra.mxu0 %v337_v1  ;;  %v340_v33 = vld [vmem:[%s577_s5] sm:$0xff]  }
  0x3b   :  { %313 = vmatprep.subr.bf16.mxu0 %v449_v0  ;;  %320 = vmatpush3.bf16.msra.mxu1 %v340_v33  ;;  %v299_v42 = vld [vmem:[%s575_s3] ss:$0 sm:$0xff]  ;;  %s451_s3 = smov [#allocation9]  }
  0x3c   :  { %321 = vmatprep.subr.bf16.mxu1 %v449_v0  ;;  %v301_v54 = vld [vmem:[%s578_s6] ss:$0 sm:$0xff]  ;;  %s281_s22 = sshll.u32 %s451_s3, 4  ;;  %s282_s22 = int_to_ptr.vmem [resolvable:$true] %s281_s22 }
  0x3d   :  { %s416_s23 = scalar_lea.vmem %s282_s22, 256  ;;  %p421_p11 = scmp.lt.s32.totalorder %s282_s22, %s282_s22 }
  0x3e   :  { %314 = vmatpush3.bf16.msra.mxu0 %v338_v2  ;;  %p417_p10 = scmp.ne.s32.totalorder %s282_s22, %s416_s23  ;;  %p422_p12 = scmp.lt.s32.totalorder %s416_s23, %s416_s23 }
  0x3f   :  { %322 = vmatpush3.bf16.msra.mxu1 %v341_v34 }
  0x40   :  { %p423_p13 = por %p422_p12, %p421_p11 }
  0x41   :  { %316 = vmatmul.mubr.msk.bf16.vlgmr.msra.gmra.mrb[0].mxu0 %vm101_vm1, %v339_v3 }
  0x42   :  { %p424_p0 = pnand %p423_p13, %p417_p10 }
 0x114   :  { %v139_v5 = vpop.f32.mrb[0].mxu0 }
 0x115   :  { %v140_v6 = vadd.f32 %v294_v4, %v139_v5  ;;  %v317_v7 = vpop.f32.mrb[1].mxu0 }
 0x116   :  { %v142_v8 = vpop.f32.mrb[2].mxu0 }
 0x117   :  { %v148_v9 = vmul.f32 0.70710677, %v140_v6  ;;  %v143_v10 = vadd.f32 %v294_v4, %v142_v8  ;;  %v318_v11 = vpop.f32.mrb[3].mxu0  ;;  %v146_v14 = vmul.f32 0.5, %v140_v6 }
 0x119   :  { %342 = verf.f32 %v148_v9  ;;  %v149_v12 = vmul.f32 0.70710677, %v143_v10  ;;  %v147_v17 = vmul.f32 0.5, %v143_v10 }
 0x11b   :  { %344 = verf.f32 %v149_v12 }
 0x123   :  { %v343_v13 = vpop.eup %342 }
 0x124   :  { %v152_v15 = vadd.f32 1.0, %v343_v13 }
 0x125   :  { %v345_v16 = vpop.eup %344 }
 0x126   :  { %v154_v18 = vmul.f32 %v152_v15, %v146_v14  ;;  %v153_v19 = vadd.f32 1.0, %v345_v16 }
 0x128   :  { %v156_v20 = vsel %vm101_vm1, %v154_v18, 0.0  ;;  %v155_v21 = vmul.f32 %v153_v19, %v147_v17 }
 0x129   :  { %157 = vadd.xlane.f32.xlu0 %v156_v20 }
 0x12a   :  { %v159_v22 = vsel %vm101_vm1, %v155_v21, 0.0 }
 0x12d   :  { %160 = vadd.xlane.f32.xlu0 %v159_v22 }
 0x1b6   :  { %v158_v23 = vpop.xlane.xlu0 %157 }
 0x1b7   :  { %v163_v24 = vmul.f32 0.03125, %v158_v23 }
 0x1b9   :  { %v165_v25 = vsub.f32 %v154_v18, %v163_v24 }
 0x1ba   :  { %v161_v26 = vpop.xlane.xlu0 %160 }
 0x1bb   :  { %v164_v27 = vmul.f32 0.03125, %v161_v26  ;;  %v167_v28 = vmul.f32 %v165_v25, %v165_v25 }
 0x1bd   :  { %v166_v29 = vsub.f32 %v155_v21, %v164_v27  ;;  %v169_v30 = vsel %vm101_vm1, %v167_v28, 0.0 }
 0x1be   :  { %170 = vadd.xlane.f32.xlu1 %v169_v30 }
 0x1bf   :  { %v168_v31 = vmul.f32 %v166_v29, %v166_v29 }
 0x1c1   :  { %v172_v32 = vsel %vm101_vm1, %v168_v31, 0.0 }
 0x1c2   :  { %173 = vadd.xlane.f32.xlu1 %v172_v32 }
 0x24b   :  { %v171_v35 = vpop.xlane.xlu1 %170 }
 0x24c   :  { %v175_v36 = vmul.f32 0.03125, %v171_v35 }
 0x24e   :  { %v177_v37 = vadd.f32 1e-05, %v175_v36 }
 0x24f   :  { %v174_v38 = vpop.xlane.xlu1 %173 }
 0x250   :  { %346 = vrsqrt.f32 %v177_v37  ;;  %v176_v39 = vmul.f32 0.03125, %v174_v38 }
 0x252   :  { %v178_v40 = vadd.f32 1e-05, %v176_v39 }
 0x254   :  { %348 = vrsqrt.f32 %v178_v40 }
 0x25a   :  { %v347_v41 = vpop.eup %346 }
 0x25b   :  { %v181_v43 = vmul.f32 %v347_v41, %v165_v25 }
 0x25d   :  { %v190_v45 = vmul.f32 %v299_v42, %v181_v43 }
 0x25e   :  { %v349_v46 = vpop.eup %348 }
 0x25f   :  { %v199_v47 = vadd.f32 %v300_v44, %v190_v45  ;;  %v182_v48 = vmul.f32 %v349_v46, %v166_v29 }
 0x261   :  { %201 = vst.msk [vmem:[#allocation2] sm:$0xff] %vm101_vm1, %v199_v47  ;;  %v191_v49 = vmul.f32 %v299_v42, %v182_v48 }
 0x263   :  { %v200_v50 = vadd.f32 %v300_v44, %v191_v49 }
 0x265   :  { %202 = vst.msk [vmem:[#allocation2 + $0x8] sm:$0xff] %vm101_vm1, %v200_v50 }
 0x268   :  { %v203_v51 = vld [vmem:[#allocation2] sm:$0xff] }
 0x26c   :  { %v204_v52 = vld [vmem:[#allocation2 + $0x8] sm:$0xff] }
 0x26d   :  { %v205_v53 = vpack.c.bf16 %v204_v52, %v203_v51 }
 0x26f   :  { %324 = vmatmul.mubr.msk.bf16.vlgmr.msra.gmra.mrb[0].mxu1 %vm101_vm1, %v205_v53 }
 0x342   :  { %v267_v55 = vpop.f32.mrb[0].mxu1 }
 0x343   :  { %v268_v56 = vadd.f32 %v301_v54, %v267_v55  ;;  %v325_v57 = vpop.f32.mrb[1].mxu1 }
 0x344   :  { %v270_v58 = vpop.f32.mrb[2].mxu1 }
 0x345   :  { %274 = vst [vmem:[#allocation9] sm:$0xff] %v268_v56  ;;  %v271_v59 = vadd.f32 %v301_v54, %v270_v58  ;;  %v326_v60 = vpop.f32.mrb[3].mxu1 }
 0x347   :  { %275 = vst [vmem:[#allocation9 + $0x8] sm:$0xff] %v271_v59 }
 0x348   :  { %427 = shalt.err (!%p424_p0)
}
 0x349   :  { %s428_s1 = scalar_lea.hbm %s579_s7, 256 }
 0x34a   :  { %p429_p1 = scmp.ne.s32.totalorder %s579_s7, %s428_s1  ;;  %p432_p2 = scmp.lt.u32.totalorder %s428_s1, %s579_s7 }
 0x34c   :  { %p434_p3 = pnand %p432_p2, %p429_p1 }
 0x34e   :  { %437 = shalt.err (!%p434_p3)
}
 0x34f   :  { %s452_s30 = smov 128   ;;  %s453_s8 = smov 8  }
 0x350   :  { %287 = dma.vmem_to_hbm [thread:$0]  %s282_s22, 256, %s579_s7, [#allocation5], %s452_s30, %s452_s30, %s453_s8  }
 0x351   :  { %442 = dma.done.wait [#allocation5], 256  }
 0x352   :  { %443 = vsyncadd [#allocation5], 4294967040 }
 0x353   :  { %291 = vsyncpa [#allocation4], 1 }
 0x354   :  { %292 = vsyncpa [#allocation7], 1 }
 0x355   :  { %293 = vsyncpa [#allocation5], 1 }

</bundles_post_ra>
